<compile_context>
chip_gen: v5e
topology: v5e:2x2
jax: 0.10.0
libtpu: 0.0.40
codegen_flags: <defaults>
</compile_context>

<pallas_src>
import functools

import jax
import jax.numpy as jnp
from jax.experimental import pallas as pl
from jax.experimental.pallas import tpu as pltpu


def mha_kernel(x_ref, wq_ref, wk_ref, wv_ref, wout_ref, bout_ref, o_ref, *, num_heads):
    """One batch element: QKV projection + head-batched attention + out projection.

    Ref shapes (batch dim squeezed away by the BlockSpec):
      x_ref:    (N, E)        f32
      wq/k/v:   (H, E, d)     bf16   (scale already folded into Wq)
      wout_ref: (H, d, E)     bf16
      bout_ref: (1, E)        f32
      o_ref:    (N, E)        f32
    """
    H = num_heads
    N, E = x_ref.shape

    # bf16 operands for the MXU; hoisted broadcast over heads (done once).
    x16 = x_ref[...].astype(jnp.bfloat16)                      # (N, E)
    xh = jnp.broadcast_to(x16[None, :, :], (H, N, E))          # (H, N, E)

    # Head-batched projections: (H,N,E) @ (H,E,d) -> (H,N,d), f32 accumulation.
    q = jnp.einsum("hne,hed->hnd", xh, wq_ref[...],
                   preferred_element_type=jnp.float32)
    k = jnp.einsum("hne,hed->hnd", xh, wk_ref[...],
                   preferred_element_type=jnp.float32)
    v = jnp.einsum("hne,hed->hnd", xh, wv_ref[...],
                   preferred_element_type=jnp.float32)

    # Scores (1/sqrt(E) already folded into Wq): (H, N, N), f32.
    s = jnp.einsum("hnd,hmd->hnm",
                   q.astype(jnp.bfloat16), k.astype(jnp.bfloat16),
                   preferred_element_type=jnp.float32)

    # Numerically-stable softmax in f32; normalization via EUP reciprocal.
    m = jnp.max(s, axis=-1, keepdims=True)
    e = jnp.exp(s - m)
    p = e * pl.reciprocal(jnp.sum(e, axis=-1, keepdims=True), approx=True)
    # attn_dropout -> identity in eval mode.

    # attn @ V: (H, N, N) @ (H, N, d) -> (H, N, d)
    o = jnp.einsum("hnm,hmd->hnd",
                   p.astype(jnp.bfloat16), v.astype(jnp.bfloat16),
                   preferred_element_type=jnp.float32)

    # Output projection as a head-batched matmul + sum over heads
    # (mathematically identical to concat(heads) @ Wout.T, without the relayout).
    out_h = jnp.einsum("hnd,hde->hne",
                       o.astype(jnp.bfloat16), wout_ref[...],
                       preferred_element_type=jnp.float32)      # (H, N, E)
    out = jnp.sum(out_h, axis=0) + bout_ref[...]                # f32 bias add
    # dropout -> identity in eval mode.
    o_ref[...] = out.astype(o_ref.dtype)


def prepare_params(w_qkv, w_out, b_out, *, num_heads):
    """One-time weight re-layout, done OUTSIDE the kernel call path.

    w_qkv: (3E, E) PyTorch nn.Linear layout (out, in), no bias.
    w_out: (E, E)  PyTorch layout, b_out: (E,).
    Returns bf16 weights shaped (H,E,d)/(H,E,d)/(H,E,d)/(H,d,E) and f32 (1,E) bias.
    """
    three_e, E = w_qkv.shape
    assert three_e == 3 * E and E % num_heads == 0
    d = E // num_heads
    scale = E ** (-0.5)  # NOTE: module scales by emb_size, not head_dim.

    wq_pt, wk_pt, wv_pt = w_qkv[:E], w_qkv[E:2 * E], w_qkv[2 * E:]

    def to_h_e_d(w):  # (E_out, E_in) -> (H, E_in, d) so q = x @ w.T per head
        return jnp.transpose(w.T.reshape(E, num_heads, d), (1, 0, 2))

    wq_h = (to_h_e_d(wq_pt) * scale).astype(jnp.bfloat16)   # scale folded in (free)
    wk_h = to_h_e_d(wk_pt).astype(jnp.bfloat16)
    wv_h = to_h_e_d(wv_pt).astype(jnp.bfloat16)
    wout_h = w_out.T.reshape(num_heads, d, E).astype(jnp.bfloat16)  # (H, d, E)
    bout = b_out.reshape(1, E).astype(jnp.float32)
    return wq_h, wk_h, wv_h, wout_h, bout


def multi_head_attention(x, params, *, num_heads):
    """x: (B, N, E) float32. params: output of prepare_params()."""
    B, N, E = x.shape
    d = E // num_heads
    wq_h, wk_h, wv_h, wout_h, bout = params

    kernel = functools.partial(mha_kernel, num_heads=num_heads)
    whole3 = lambda b: (0, 0, 0)

    return pl.pallas_call(
        kernel,
        out_shape=jax.ShapeDtypeStruct((B, N, E), x.dtype),
        grid_spec=pltpu.PrefetchScalarGridSpec(
            num_scalar_prefetch=0,
            grid=(B,),
            in_specs=[
                # x: one batch element, leading unit dim squeezed -> kernel sees (N, E)
                pl.BlockSpec((pl.Squeezed(), N, E), lambda b: (b, 0, 0)),
                pl.BlockSpec((num_heads, E, d), whole3),   # Wq (scale folded), bf16
                pl.BlockSpec((num_heads, E, d), whole3),   # Wk, bf16
                pl.BlockSpec((num_heads, E, d), whole3),   # Wv, bf16
                pl.BlockSpec((num_heads, d, E), whole3),   # Wout, bf16
                pl.BlockSpec((1, E), lambda b: (0, 0)),    # bias, f32
            ],
            out_specs=pl.BlockSpec((pl.Squeezed(), N, E), lambda b: (b, 0, 0)),
        ),
        compiler_params=pltpu.CompilerParams(
            dimension_semantics=("parallel",),
            vmem_limit_bytes=32 * 1024 * 1024,
        ),
    )(x, wq_h, wk_h, wv_h, wout_h, bout)


def reference_mha(x, w_qkv, w_out, b_out, *, num_heads):
    """Pure-JAX f32 reference mirroring the PyTorch forward (eval mode)."""
    B, N, E = x.shape
    d = E // num_heads
    scale = E ** (-0.5)
    qkv = jnp.einsum("bne,fe->bnf", x, w_qkv)      # (B, N, 3E)
    q, k, v = jnp.split(qkv, 3, axis=-1)

    def split_heads(t):
        return t.reshape(B, N, num_heads, d).transpose(0, 2, 1, 3)  # (B, H, N, d)

    q, k, v = map(split_heads, (q, k, v))
    dots = jnp.einsum("bhid,bhjd->bhij", q, k) * scale
    attn = jax.nn.softmax(dots, axis=-1)
    out = jnp.einsum("bhij,bhjd->bhid", attn, v)
    out = out.transpose(0, 2, 1, 3).reshape(B, N, E)
    return jnp.einsum("bne,fe->bnf", out, w_out) + b_out


if __name__ == "__main__":
    # Small shapes consistent with the module: batch=2, seq=8, emb=32, heads=4.
    B, N, E, H = 2, 8, 32, 4

    key = jax.random.PRNGKey(0)
    kx, kqkv, kw, kb = jax.random.split(key, 4)

    x = jax.random.normal(kx, (B, N, E), dtype=jnp.float32)
    # PyTorch layout: Linear weight is (out, in).
    w_qkv = jax.random.normal(kqkv, (3 * E, E), dtype=jnp.float32) * (1.0 / E ** 0.5)
    w_out = jax.random.normal(kw, (E, E), dtype=jnp.float32) * (1.0 / E ** 0.5)
    b_out = jax.random.normal(kb, (E,), dtype=jnp.float32) * 0.01

    # One-time weight preparation, outside the kernel call path.
    params = prepare_params(w_qkv, w_out, b_out, num_heads=H)

    out = multi_head_attention(x, params, num_heads=H)
    out = jax.block_until_ready(out)

    ref = reference_mha(x, w_qkv, w_out, b_out, num_heads=H)
    # bf16 matmul operands (f32 accumulation) vs an f32 reference -> loosened tol.
    assert jnp.allclose(out, ref, atol=5e-2, rtol=5e-2), "mismatch vs JAX reference"

    print("KERNEL_OK")
</pallas_src>

<mosaic_0001>
module attributes {stable_mosaic.version = 11 : i64} {
  func.func @mha_kernel(%arg0: i32, %arg1: memref<1x8x32xf32, #tpu.memory_space<vmem>>, %arg2: memref<4x32x8xbf16, #tpu.memory_space<vmem>>, %arg3: memref<4x32x8xbf16, #tpu.memory_space<vmem>>, %arg4: memref<4x32x8xbf16, #tpu.memory_space<vmem>>, %arg5: memref<4x8x32xbf16, #tpu.memory_space<vmem>>, %arg6: memref<1x32xf32, #tpu.memory_space<vmem>>, %arg7: memref<1x8x32xf32, #tpu.memory_space<vmem>>) attributes {dimension_semantics = [#tpu.dimension_semantics<parallel>], iteration_bounds = array<i64: 2>, scalar_prefetch = 0 : i64, scratch_operands = 0 : i64, tpu.core_type = #tpu.core_type<tc>, window_params = [{transform_indices = @transform_0, window_bounds = array<i64: 1, 8, 32>}, {pipeline_mode = #tpu.pipeline_mode<synchronous>, transform_indices = @transform_1, window_bounds = array<i64: 4, 32, 8>}, {pipeline_mode = #tpu.pipeline_mode<synchronous>, transform_indices = @transform_2, window_bounds = array<i64: 4, 32, 8>}, {pipeline_mode = #tpu.pipeline_mode<synchronous>, transform_indices = @transform_3, window_bounds = array<i64: 4, 32, 8>}, {pipeline_mode = #tpu.pipeline_mode<synchronous>, transform_indices = @transform_4, window_bounds = array<i64: 4, 8, 32>}, {pipeline_mode = #tpu.pipeline_mode<synchronous>, transform_indices = @transform_5, window_bounds = array<i64: 1, 32>}, {transform_indices = @transform_6, window_bounds = array<i64: 1, 8, 32>}]} {
    %c0 = arith.constant 0 : index
    %c0_0 = arith.constant 0 : index
    %c0_1 = arith.constant 0 : index
    %0 = vector.load %arg1[%c0, %c0_0, %c0_1] : memref<1x8x32xf32, #tpu.memory_space<vmem>>, vector<1x8x32xf32>
    %1 = vector.shape_cast %0 : vector<1x8x32xf32> to vector<8x32xf32>
    %2 = arith.truncf %1 : vector<8x32xf32> to vector<8x32xbf16>
    %3 = vector.shape_cast %2 : vector<8x32xbf16> to vector<1x8x32xbf16>
    %4 = vector.shape_cast %3 : vector<1x8x32xbf16> to vector<1x8x32xbf16>
    %5 = vector.broadcast %4 : vector<1x8x32xbf16> to vector<4x8x32xbf16>
    %c0_2 = arith.constant 0 : index
    %c0_3 = arith.constant 0 : index
    %c0_4 = arith.constant 0 : index
    %6 = vector.load %arg2[%c0_2, %c0_3, %c0_4] : memref<4x32x8xbf16, #tpu.memory_space<vmem>>, vector<4x32x8xbf16>
    "tpu.trace_start"() <{level = 10 : i32, message = "hne,hed->hnd"}> : () -> ()
    %cst = arith.constant dense<0.000000e+00> : vector<4x8x8xf32>
    %7 = tpu.matmul %5, %6, %cst {dimension_numbers = #tpu.dot_dimension_numbers<[2], [1], [1], [2], [0, 0, 0, 1, 1, 2], [0], [0]>} : vector<4x8x32xbf16>, vector<4x32x8xbf16>, vector<4x8x8xf32> -> vector<4x8x8xf32>
    "tpu.trace_stop"() : () -> ()
    %c0_5 = arith.constant 0 : index
    %c0_6 = arith.constant 0 : index
    %c0_7 = arith.constant 0 : index
    %8 = vector.load %arg3[%c0_5, %c0_6, %c0_7] : memref<4x32x8xbf16, #tpu.memory_space<vmem>>, vector<4x32x8xbf16>
    "tpu.trace_start"() <{level = 10 : i32, message = "hne,hed->hnd"}> : () -> ()
    %cst_8 = arith.constant dense<0.000000e+00> : vector<4x8x8xf32>
    %9 = tpu.matmul %5, %8, %cst_8 {dimension_numbers = #tpu.dot_dimension_numbers<[2], [1], [1], [2], [0, 0, 0, 1, 1, 2], [0], [0]>} : vector<4x8x32xbf16>, vector<4x32x8xbf16>, vector<4x8x8xf32> -> vector<4x8x8xf32>
    "tpu.trace_stop"() : () -> ()
    %c0_9 = arith.constant 0 : index
    %c0_10 = arith.constant 0 : index
    %c0_11 = arith.constant 0 : index
    %10 = vector.load %arg4[%c0_9, %c0_10, %c0_11] : memref<4x32x8xbf16, #tpu.memory_space<vmem>>, vector<4x32x8xbf16>
    "tpu.trace_start"() <{level = 10 : i32, message = "hne,hed->hnd"}> : () -> ()
    %cst_12 = arith.constant dense<0.000000e+00> : vector<4x8x8xf32>
    %11 = tpu.matmul %5, %10, %cst_12 {dimension_numbers = #tpu.dot_dimension_numbers<[2], [1], [1], [2], [0, 0, 0, 1, 1, 2], [0], [0]>} : vector<4x8x32xbf16>, vector<4x32x8xbf16>, vector<4x8x8xf32> -> vector<4x8x8xf32>
    "tpu.trace_stop"() : () -> ()
    %12 = arith.truncf %7 : vector<4x8x8xf32> to vector<4x8x8xbf16>
    %13 = arith.truncf %9 : vector<4x8x8xf32> to vector<4x8x8xbf16>
    "tpu.trace_start"() <{level = 10 : i32, message = "hnd,hmd->hnm"}> : () -> ()
    %cst_13 = arith.constant dense<0.000000e+00> : vector<4x8x8xf32>
    %14 = tpu.matmul %12, %13, %cst_13 {dimension_numbers = #tpu.dot_dimension_numbers<[2], [2], [1], [1], [0, 0, 0, 1, 1, 1], [0], [0]>} : vector<4x8x8xbf16>, vector<4x8x8xbf16>, vector<4x8x8xf32> -> vector<4x8x8xf32>
    "tpu.trace_stop"() : () -> ()
    %cst_14 = arith.constant dense<0xFF800000> : vector<4x8xf32>
    %15 = vector.multi_reduction <maximumf>, %14, %cst_14 [2] : vector<4x8x8xf32> to vector<4x8xf32>
    %16 = vector.shape_cast %15 : vector<4x8xf32> to vector<4x8x1xf32>
    %17 = vector.broadcast %16 : vector<4x8x1xf32> to vector<4x8x8xf32>
    %18 = arith.subf %14, %17 : vector<4x8x8xf32>
    %19 = math.exp %18 : vector<4x8x8xf32>
    %cst_15 = arith.constant dense<0.000000e+00> : vector<4x8xf32>
    %20 = vector.multi_reduction <add>, %19, %cst_15 [2] : vector<4x8x8xf32> to vector<4x8xf32>
    %21 = vector.shape_cast %20 : vector<4x8xf32> to vector<4x8x1xf32>
    %22 = tpu.reciprocal %21 {approx = true} : vector<4x8x1xf32> -> vector<4x8x1xf32>
    %23 = vector.broadcast %22 : vector<4x8x1xf32> to vector<4x8x8xf32>
    %24 = arith.mulf %19, %23 : vector<4x8x8xf32>
    %25 = arith.truncf %24 : vector<4x8x8xf32> to vector<4x8x8xbf16>
    %26 = arith.truncf %11 : vector<4x8x8xf32> to vector<4x8x8xbf16>
    "tpu.trace_start"() <{level = 10 : i32, message = "hnm,hmd->hnd"}> : () -> ()
    %cst_16 = arith.constant dense<0.000000e+00> : vector<4x8x8xf32>
    %27 = tpu.matmul %25, %26, %cst_16 {dimension_numbers = #tpu.dot_dimension_numbers<[2], [1], [1], [2], [0, 0, 0, 1, 1, 2], [0], [0]>} : vector<4x8x8xbf16>, vector<4x8x8xbf16>, vector<4x8x8xf32> -> vector<4x8x8xf32>
    "tpu.trace_stop"() : () -> ()
    %28 = arith.truncf %27 : vector<4x8x8xf32> to vector<4x8x8xbf16>
    %c0_17 = arith.constant 0 : index
    %c0_18 = arith.constant 0 : index
    %c0_19 = arith.constant 0 : index
    %29 = vector.load %arg5[%c0_17, %c0_18, %c0_19] : memref<4x8x32xbf16, #tpu.memory_space<vmem>>, vector<4x8x32xbf16>
    "tpu.trace_start"() <{level = 10 : i32, message = "hnd,hde->hne"}> : () -> ()
    %cst_20 = arith.constant dense<0.000000e+00> : vector<4x8x32xf32>
    %30 = tpu.matmul %28, %29, %cst_20 {dimension_numbers = #tpu.dot_dimension_numbers<[2], [1], [1], [2], [0, 0, 0, 1, 1, 2], [0], [0]>} : vector<4x8x8xbf16>, vector<4x8x32xbf16>, vector<4x8x32xf32> -> vector<4x8x32xf32>
    "tpu.trace_stop"() : () -> ()
    %cst_21 = arith.constant dense<0.000000e+00> : vector<8x32xf32>
    %31 = vector.multi_reduction <add>, %30, %cst_21 [0] : vector<4x8x32xf32> to vector<8x32xf32>
    %c0_22 = arith.constant 0 : index
    %c0_23 = arith.constant 0 : index
    %32 = vector.load %arg6[%c0_22, %c0_23] : memref<1x32xf32, #tpu.memory_space<vmem>>, vector<1x32xf32>
    %33 = vector.broadcast %32 : vector<1x32xf32> to vector<8x32xf32>
    %34 = arith.addf %31, %33 : vector<8x32xf32>
    %c0_24 = arith.constant 0 : index
    %c0_25 = arith.constant 0 : index
    %c0_26 = arith.constant 0 : index
    %35 = vector.load %arg7[%c0_24, %c0_25, %c0_26] : memref<1x8x32xf32, #tpu.memory_space<vmem>>, vector<1x8x32xf32>
    %36 = vector.shape_cast %35 : vector<1x8x32xf32> to vector<8x32xf32>
    %37 = vector.shape_cast %34 : vector<8x32xf32> to vector<1x8x32xf32>
    tpu.vector_store %arg7[%c0_24, %c0_25, %c0_26], %37 {strides = array<i32>} : memref<1x8x32xf32, #tpu.memory_space<vmem>>, vector<1x8x32xf32>,
    return
  }
  func.func @transform_0(%arg0: i32) -> (i32, i32, i32) {
    %c0_i32 = arith.constant 0 : i32
    %c0_i32_0 = arith.constant 0 : i32
    %c0_i32_1 = arith.constant 0 : i32
    return %arg0, %c0_i32, %c0_i32_0 : i32, i32, i32
  }
  func.func @transform_1(%arg0: i32) -> (i32, i32, i32) {
    %c0_i32 = arith.constant 0 : i32
    %c0_i32_0 = arith.constant 0 : i32
    %c0_i32_1 = arith.constant 0 : i32
    %c0_i32_2 = arith.constant 0 : i32
    return %c0_i32, %c0_i32_0, %c0_i32_1 : i32, i32, i32
  }
  func.func @transform_2(%arg0: i32) -> (i32, i32, i32) {
    %c0_i32 = arith.constant 0 : i32
    %c0_i32_0 = arith.constant 0 : i32
    %c0_i32_1 = arith.constant 0 : i32
    %c0_i32_2 = arith.constant 0 : i32
    return %c0_i32, %c0_i32_0, %c0_i32_1 : i32, i32, i32
  }
  func.func @transform_3(%arg0: i32) -> (i32, i32, i32) {
    %c0_i32 = arith.constant 0 : i32
    %c0_i32_0 = arith.constant 0 : i32
    %c0_i32_1 = arith.constant 0 : i32
    %c0_i32_2 = arith.constant 0 : i32
    return %c0_i32, %c0_i32_0, %c0_i32_1 : i32, i32, i32
  }
  func.func @transform_4(%arg0: i32) -> (i32, i32, i32) {
    %c0_i32 = arith.constant 0 : i32
    %c0_i32_0 = arith.constant 0 : i32
    %c0_i32_1 = arith.constant 0 : i32
    %c0_i32_2 = arith.constant 0 : i32
    return %c0_i32, %c0_i32_0, %c0_i32_1 : i32, i32, i32
  }
  func.func @transform_5(%arg0: i32) -> (i32, i32) {
    %c0_i32 = arith.constant 0 : i32
    %c0_i32_0 = arith.constant 0 : i32
    %c0_i32_1 = arith.constant 0 : i32
    return %c0_i32, %c0_i32_0 : i32, i32
  }
  func.func @transform_6(%arg0: i32) -> (i32, i32, i32) {
    %c0_i32 = arith.constant 0 : i32
    %c0_i32_0 = arith.constant 0 : i32
    %c0_i32_1 = arith.constant 0 : i32
    return %arg0, %c0_i32, %c0_i32_0 : i32, i32, i32
  }
}

</mosaic_0001>

<bundles_post_ra>
// kernel: tpu_custom_call.1
= control target key start
LH: loop header
LB: loop body
LE: loop exit
PB: predicated region body
PF: predicated region fallthrough
CT: control target
= control target key end

     0   :  { %11 = vsyncpa [#allocation3], 0  ;;  %s1518_s0 = inlined_call_operand.vmem [shape: f32[2,8,32], index: 0, kind: input, shape index: {}]   ;;  %s1519_s1 = inlined_call_operand.vmem [shape: bf16[4,32,8], index: 1, kind: input, shape index: {}]   ;;  %s1520_s2 = inlined_call_operand.vmem [shape: bf16[4,32,8], index: 2, kind: input, shape index: {}]   ;;  %s1521_s3 = inlined_call_operand.vmem [shape: bf16[4,32,8], index: 3, kind: input, shape index: {}]   ;;  %s1522_s4 = inlined_call_operand.vmem [shape: bf16[4,8,32], index: 4, kind: input, shape index: {}]   ;;  %s1523_s5 = inlined_call_operand.vmem [shape: f32[1,32], index: 5, kind: input, shape index: {}]   ;;  %s1524_s6 = inlined_call_operand.hbm [shape: f32[2,8,32], index: 6, kind: output, shape index: {}]  }
   0x1   :  { %13 = vsyncpa [#allocation3 + $0x1], 0  ;;  %s1297_s21 = smov 0   ;;  %s1299_s22 = smov 0  }
   0x2   :  { %s1301_s23 = smov 0   ;;  %s1303_s24 = smov 0  }
   0x3 LB: > { %s1318_s25 = sadd.s32 4294967295, %s1260_s24   ;;  %s988_s26 = sadd.s32 4294967294, %s1260_s24   ;;  %s1260_s24 = sphi %s1303_s24, %s1530_s24   ;;  %s1256_s23 = sphi %s1301_s23, %s1529_s23   ;;  %s1252_s22 = sphi %s1299_s22, %s1528_s22   ;;  %s1248_s21 = sphi %s1297_s21, %s1527_s21  }
   0x4   : > { %s1322_s27 = sadd.s32 1, %s1260_s24   ;;  %s157_s28 = sadd.s32 1, %s1256_s23 }
   0x5   : > { %s154_s29 = ssub.s32 %s1260_s24, %s1322_s27  ;;  %p167_p0 = scmp.ne.s32.totalorder %s1256_s23, %s1252_s22 }
   0x6   : > { %p155_p1 = scmp.eq.s32.totalorder %s154_s29, 0  ;;  %p168_p2 = scmp.eq.s32.totalorder %s1318_s25, 1 }
   0x7   : > { %p173_p3 = scmp.ne.s32.totalorder %s1252_s22, %s1248_s21  ;;  %p174_p4 = scmp.eq.s32.totalorder %s988_s26, 1 }
   0x8   : > { %s1333_s30 = scalar_select %p155_p1, %s1256_s23, %s157_s28  }
   0x9   : > { %p1335_p5 = por %p168_p2, %p167_p0  ;;  %p1339_p6 = por %p174_p4, %p173_p3 }
   0xa   : > { %p991_p7 = scmp.ge.s32.totalorder %s1260_s24, 1  ;;  %p214_p8 = scmp.lt.s32.totalorder %s1260_s24, 3 }
   0xc   : > { %p215_p9 = pnand %p991_p7, %p214_p8 }
   0xd   : > { %p243_p10 = scmp.lt.s32.totalorder (!%p215_p9), %s1318_s25, 1  ;;  %s240_s10 = sand.u32 (!%p215_p9), 1, %s1252_s22  }
   0xe   : > { %218 = sbr.rel (%p215_p9) target bundleno = 857 (0x359), region = 44  ;;  %s1115_s12 = sshll.u32 (!%p215_p9), %s1318_s25, 3 }
   0xf   : > { %s924_s15 = scalar_lea.hbm (!%p215_p9), %s1524_s6, %s1115_s12  ;;  %s914_s20 = scalar_lea.sflag (!%p215_p9), [#allocation3], %s240_s10 }
  0x10   : > { %s928_s19 = sshll.u32 (!%p215_p9), %s924_s15, 4  ;;  %s929_s19 = int_to_ptr.hbm [resolvable:$true] %s928_s19 }
  0x13   : > { %v1119_v0 = vld [vmem:[%s1519_s1 + $0x8] sm:$0xff]  ;;  %v1121_v1 = vld [vmem:[%s1519_s1 + $0x18] sm:$0xff]  ;;  %v1118_v4 = vld [vmem:[%s1519_s1] sm:$0xff]  ;;  %s244_s26 = scalar_select %p243_p10, %s1318_s25, 1  ;;  %vm278_vm0 = vcmask 261120   ;;  %vm610_vm1 = vcmask 64512  }
  0x14   : > { %v1123_v2 = vld [vmem:[%s1519_s1 + $0x28] sm:$0xff]  ;;  %v1125_v3 = vld [vmem:[%s1519_s1 + $0x38] sm:$0xff]  ;;  %288 = vmatpush.bf16.msra.mxu0 %v1119_v0  ;;  %313 = vmatpush.bf16.msra.mxu1 %v1121_v1  ;;  %v1120_v5 = vld [vmem:[%s1519_s1 + $0x10] sm:$0xff]  ;;  %vm742_vm2 = vcmask 1043456  }
  0x15   : > { %338 = vmatpush.bf16.msra.mxu2 %v1123_v2  ;;  %363 = vmatpush.bf16.msra.mxu3 %v1125_v3  ;;  %v1122_v6 = vld [vmem:[%s1519_s1 + $0x20] sm:$0xff]  ;;  %v1124_v7 = vld [vmem:[%s1519_s1 + $0x30] sm:$0xff]  ;;  %s993_s11 = sshll.u32 %s244_s26, 3  ;;  %v1127_v8 = vld [vmem:[%s1520_s2 + $0x8] sm:$0xff]  ;;  %s1212_s26 = sshra.s32 %s929_s19, 4  ;;  %s1213_s26 = int_to_ptr.hbm [resolvable:$true] %s1212_s26 }
  0x16   : > { %v1129_v9 = vld [vmem:[%s1520_s2 + $0x18] sm:$0xff]  ;;  %s246_s18 = scalar_lea.vmem %s1518_s0, %s993_s11  ;;  %v1131_v12 = vld [vmem:[%s1520_s2 + $0x28] sm:$0xff]  ;;  %v1126_v14 = vld [vmem:[%s1520_s2] sm:$0xff]  ;;  %s992_s11 = sshll.u32 %s240_s10, 3 }
  0x17   : > { %v248_v10 = vld [vmem:[%s246_s18] sm:$0xff]  ;;  %v1133_v13 = vld [vmem:[%s1520_s2 + $0x38] sm:$0xff]  ;;  %v1128_v15 = vld [vmem:[%s1520_s2 + $0x10] sm:$0xff]  ;;  %s242_s25 = scalar_lea.vmem [#allocation2], %s992_s11  ;;  %s1214_s28 = scalar_lea.hbm %s1213_s26, 8 }
  0x18   : > { %289 = vmatpush.bf16.msra.mxu0 %v1118_v4  ;;  %314 = vmatpush.bf16.msra.mxu1 %v1120_v5  ;;  %v249_v11 = vpack.c.bf16 %v248_v10, %v248_v10  ;;  %v1130_v16 = vld [vmem:[%s1520_s2 + $0x20] sm:$0xff]  ;;  %v1132_v17 = vld [vmem:[%s1520_s2 + $0x30] sm:$0xff]  ;;  %v1135_v18 = vld [vmem:[%s1521_s3 + $0x8] sm:$0xff]  ;;  %s926_s18 = sshll.u32 %s242_s25, 4  ;;  %p1215_p11 = scmp.ne.s32.totalorder %s1213_s26, %s1214_s28  ;;  %s927_s18 = int_to_ptr.vmem [resolvable:$true] %s926_s18 }
  0x19   : > { %339 = vmatpush.bf16.msra.mxu2 %v1122_v6  ;;  %364 = vmatpush.bf16.msra.mxu3 %v1124_v7  ;;  %v1137_v19 = vld [vmem:[%s1521_s3 + $0x18] sm:$0xff]  ;;  %v1139_v20 = vld [vmem:[%s1521_s3 + $0x28] sm:$0xff]  ;;  %v1138_v21 = vld [vmem:[%s1521_s3 + $0x20] sm:$0xff]  ;;  %s1218_s11 = scalar_lea.hbm %s1524_s6, 16  ;;  %p1219_p0 = scmp.lt.s32.totalorder %s1213_s26, %s1524_s6 }
  0x1a   : > { %v1134_v22 = vld [vmem:[%s1521_s3] sm:$0xff]  ;;  %v1136_v23 = vld [vmem:[%s1521_s3 + $0x10] sm:$0xff]  ;;  %v1141_v24 = vld [vmem:[%s1521_s3 + $0x38] sm:$0xff]  ;;  %p1216_p12 = pnand %p1215_p11, %p1335_p5  ;;  %p1220_p1 = scmp.lt.s32.totalorder %s1218_s11, %s1214_s28 }
  0x1b   : > { %1002 = vmatmul.msk.bf16.vlgmr.msra.gmra.mxu0 %vm278_vm0, %v249_v11  ;;  %1011 = vmatmul.msk.bf16.vlgmr.msra.gmra.mxu1 %vm278_vm0, %v249_v11  ;;  %v1140_v25 = vld [vmem:[%s1521_s3 + $0x30] sm:$0xff] }
  0x1c   : > { %404 = vmatpush.bf16.msrb.mxu0 %v1127_v8  ;;  %429 = vmatpush.bf16.msrb.mxu1 %v1129_v9  ;;  %p1217_p13 = pneg %p1216_p12  ;;  %p1221_p2 = por %p1220_p1, %p1219_p0 }
  0x1d   : > { %1020 = vmatmul.msk.bf16.vlgmr.msra.gmra.mxu2 %vm278_vm0, %v249_v11  ;;  %1029 = vmatmul.msk.bf16.vlgmr.msra.gmra.mxu3 %vm278_vm0, %v249_v11 }
  0x1e   : > { %454 = vmatpush.bf16.msrb.mxu2 %v1131_v12  ;;  %479 = vmatpush.bf16.msrb.mxu3 %v1133_v13  ;;  %p1222_p3 = pnand %p1221_p2, %p1217_p13 }
  0x20   : > { %405 = vmatpush.bf16.msrb.mxu0 %v1126_v14  ;;  %430 = vmatpush.bf16.msrb.mxu1 %v1128_v15 }
  0x22   : > { %455 = vmatpush.bf16.msrb.mxu2 %v1130_v16  ;;  %480 = vmatpush.bf16.msrb.mxu3 %v1132_v17 }
  0x24   : > { %520 = vmatpush.bf16.msra.mxu0 %v1135_v18  ;;  %545 = vmatpush.bf16.msra.mxu1 %v1137_v19 }
  0x26   : > { %570 = vmatpush.bf16.msra.mxu2 %v1139_v20  ;;  %595 = vmatpush.bf16.msra.mxu3 %v1141_v24 }
  0x28   : > { %521 = vmatpush.bf16.msra.mxu0 %v1134_v22  ;;  %546 = vmatpush.bf16.msra.mxu1 %v1136_v23 }
  0x2a   : > { %571 = vmatpush.bf16.msra.mxu2 %v1138_v21  ;;  %596 = vmatpush.bf16.msra.mxu3 %v1140_v25 }
  0x2b   : > { %1038 = vmatmul.msk.bf16.vlgmr.msrb.gmra.mxu0 %vm278_vm0, %v249_v11  ;;  %1047 = vmatmul.msk.bf16.vlgmr.msrb.gmra.mxu1 %vm278_vm0, %v249_v11 }
  0x2d   : > { %1056 = vmatmul.msk.bf16.vlgmr.msrb.gmra.mxu2 %vm278_vm0, %v249_v11  ;;  %1065 = vmatmul.msk.bf16.vlgmr.msrb.gmra.mxu3 %vm278_vm0, %v249_v11 }
  0x3b   : > { %1074 = vmatmul.msk.bf16.vlgmr.msra.gmra.mxu0 %vm278_vm0, %v249_v11  ;;  %1083 = vmatmul.msk.bf16.vlgmr.msra.gmra.mxu1 %vm278_vm0, %v249_v11 }
  0x3d   : > { %1092 = vmatmul.msk.bf16.vlgmr.msra.gmra.mxu2 %vm278_vm0, %v249_v11  ;;  %1101 = vmatmul.msk.bf16.vlgmr.msra.gmra.mxu3 %vm278_vm0, %v249_v11 }
  0x98   : > { %v291_v26 = vpop.f32.mrf.mxu0  ;;  %v316_v27 = vpop.f32.mrf.mxu1 }
  0x99   : > { %v603_v42 = vpack.c.bf16 %v316_v27, %v316_v27  ;;  %v602_v47 = vpack.c.bf16 %v291_v26, %v291_v26 }
  0xa0   : > { %v341_v28 = vpop.f32.mrf.mxu2  ;;  %v366_v29 = vpop.f32.mrf.mxu3 }
  0xa1   : > { %v293_v30 = vpop.f32.mrf.mxu0  ;;  %v318_v31 = vpop.f32.mrf.mxu1  ;;  %v604_v52 = vpack.c.bf16 %v341_v28, %v341_v28  ;;  %v605_v53 = vpack.c.bf16 %v366_v29, %v366_v29 }
  0xa8   : > { %v343_v32 = vpop.f32.mrf.mxu2  ;;  %v368_v33 = vpop.f32.mrf.mxu3 }
  0xa9   : > { %v407_v34 = vpop.f32.mrf.mxu0  ;;  %v432_v35 = vpop.f32.mrf.mxu1 }
  0xaa   : > { %v606_v36 = vpack.c.bf16 %v407_v34, %v407_v34  ;;  %v607_v37 = vpack.c.bf16 %v432_v35, %v432_v35 }
  0xac   : > { %v615_v38 = vsel %vm610_vm1, %v606_v36, 0  ;;  %v634_v39 = vsel %vm610_vm1, %v607_v37, 0 }
  0xad   : > { %624 = vmatpush.bf16.xpose.msrb.mxu0 %v615_v38  ;;  %643 = vmatpush.bf16.xpose.msrb.mxu1 %v634_v39 }
  0xb0   : > { %v457_v40 = vpop.f32.mrf.mxu2  ;;  %v482_v41 = vpop.f32.mrf.mxu3 }
  0xb1   : > { %v608_v43 = vpack.c.bf16 %v457_v40, %v457_v40  ;;  %v609_v44 = vpack.c.bf16 %v482_v41, %v482_v41  ;;  %v409_v45 = vpop.f32.mrf.mxu0  ;;  %v434_v46 = vpop.f32.mrf.mxu1 }
  0xb3   : > { %v653_v48 = vsel %vm610_vm1, %v608_v43, 0  ;;  %v672_v49 = vsel %vm610_vm1, %v609_v44, 0 }
  0xb4   : > { %662 = vmatpush.bf16.xpose.msrb.mxu2 %v653_v48  ;;  %681 = vmatpush.bf16.xpose.msrb.mxu3 %v672_v49 }
  0xb5   : > { %1102 = vmatmul.msk.bf16.vlgmr.msrb.gmra.mxu0 %vm610_vm1, %v602_v47  ;;  %1103 = vmatmul.msk.bf16.vlgmr.msrb.gmra.mxu1 %vm610_vm1, %v603_v42 }
  0xb8   : > { %v459_v50 = vpop.f32.mrf.mxu2  ;;  %v484_v51 = vpop.f32.mrf.mxu3 }
  0xb9   : > { %v523_v54 = vpop.f32.mrf.mxu0  ;;  %v548_v55 = vpop.f32.mrf.mxu1 }
  0xba   : > { %v735_v56 = vpack.c.bf16 %v523_v54, %v523_v54  ;;  %v736_v57 = vpack.c.bf16 %v548_v55, %v548_v55  ;;  %v820_v54 = vld [vmem:[%s1522_s4] sm:$0xf] }
  0xbb   : > { %1104 = vmatmul.msk.bf16.vlgmr.msrb.gmra.mxu2 %vm610_vm1, %v604_v52  ;;  %1105 = vmatmul.msk.bf16.vlgmr.msrb.gmra.mxu3 %vm610_vm1, %v605_v53  ;;  %v828_v55 = vsel %vm742_vm2, %v820_v54, 0 }
  0xbc   : > { %v744_v58 = vsel %vm742_vm2, %v735_v56, 0  ;;  %v763_v59 = vsel %vm742_vm2, %v736_v57, 0  ;;  %v821_v56 = vld [vmem:[%s1522_s4 + $0x4] sm:$0xf] }
  0xbd   : > { %753 = vmatpush.bf16.msra.mxu0 %v744_v58  ;;  %772 = vmatpush.bf16.msra.mxu1 %v763_v59  ;;  %v847_v57 = vsel %vm742_vm2, %v821_v56, 0  ;;  %v822_v58 = vld [vmem:[%s1522_s4 + $0x8] sm:$0xf] }
  0xbe   : > { %v866_v59 = vsel %vm742_vm2, %v822_v58, 0 }
  0xc0   : > { %v573_v60 = vpop.f32.mrf.mxu2  ;;  %v598_v1 = vpop.f32.mrf.mxu3 }
  0xc1   : > { %v737_v61 = vpack.c.bf16 %v573_v60, %v573_v60  ;;  %v525_v62 = vpop.f32.mrf.mxu0  ;;  %v550_v63 = vpop.f32.mrf.mxu1  ;;  %v738_v2 = vpack.c.bf16 %v598_v1, %v598_v1  ;;  %837 = vmatpush.bf16.msrb.mxu0 %v828_v55  ;;  %856 = vmatpush.bf16.msrb.mxu1 %v847_v57  ;;  %v823_v60 = vld [vmem:[%s1522_s4 + $0xc] sm:$0xf] }
  0xc3   : > { %v782_v0 = vsel %vm742_vm2, %v737_v61, 0  ;;  %v801_v4 = vsel %vm742_vm2, %v738_v2, 0  ;;  %v885_v61 = vsel %vm742_vm2, %v823_v60, 0 }
  0xc4   : > { %791 = vmatpush.bf16.msra.mxu2 %v782_v0  ;;  %810 = vmatpush.bf16.msra.mxu3 %v801_v4 }
  0xc8   : > { %v575_v3 = vpop.f32.mrf.mxu2  ;;  %v600_v5 = vpop.f32.mrf.mxu3  ;;  %875 = vmatpush.bf16.msrb.mxu2 %v866_v59  ;;  %894 = vmatpush.bf16.msrb.mxu3 %v885_v61 }
 0x132   : > { %v626_v6 = vpop.f32.mrf.mxu0  ;;  %v645_v7 = vpop.f32.mrf.mxu1 }
 0x133   : > { %v687_v8 = vsel %vm610_vm1, %v626_v6, -inf  ;;  %v690_v11 = vsel %vm610_vm1, %v645_v7, -inf }
 0x134   : > { %688 = vmax.xlane.f32.xlu1 %v687_v8 }
 0x13a   : > { %v628_v9 = vpop.f32.mrf.mxu0  ;;  %v647_v10 = vpop.f32.mrf.mxu1 }
 0x13c   : > { %691 = vmax.xlane.f32.xlu1 %v690_v11 }
 0x13e   : > { %v664_v12 = vpop.f32.mrf.mxu2  ;;  %v683_v13 = vpop.f32.mrf.mxu3 }
 0x13f   : > { %v693_v14 = vsel %vm610_vm1, %v664_v12, -inf  ;;  %v696_v17 = vsel %vm610_vm1, %v683_v13, -inf }
 0x140   : > { %694 = vmax.xlane.f32.xlu0 %v693_v14 }
 0x146   : > { %v666_v15 = vpop.f32.mrf.mxu2  ;;  %v685_v16 = vpop.f32.mrf.mxu3 }
 0x148   : > { %697 = vmax.xlane.f32.xlu0 %v696_v17 }
 0x1a7   : > { %v689_v18 = vpop.xlane.xlu1 %688 }
 0x1a8   : > { %v699_v19 = vsub.f32 %v626_v6, %v689_v18 }
 0x1aa   : > { %v703_v20 = vmul.f32 1.442695, %v699_v19 }
 0x1ac   : > { %1182 = vpow2.f32 %v703_v20 }
 0x1af   : > { %v692_v21 = vpop.xlane.xlu1 %691 }
 0x1b0   : > { %v700_v22 = vsub.f32 %v645_v7, %v692_v21 }
 0x1b2   : > { %v1183_v23 = vpop.eup %1182  ;;  %v705_v24 = vmul.f32 1.442695, %v700_v22  ;;  %v1181_v22 = vld [vmem:[%s1523_s5] ss:$0 sm:$0xff] }
 0x1b3   : > { %v695_v25 = vpop.xlane.xlu0 %694  ;;  %v711_v26 = vsel %vm610_vm1, %v1183_v23, 0.0 }
 0x1b4   : > { %1184 = vpow2.f32 %v705_v24  ;;  %v701_v27 = vsub.f32 %v664_v12, %v695_v25  ;;  %712 = vadd.xlane.f32.xlu0 %v711_v26 }
 0x1b6   : > { %v707_v28 = vmul.f32 1.442695, %v701_v27 }
 0x1b8   : > { %1186 = vpow2.f32 %v707_v28 }
 0x1ba   : > { %v1185_v29 = vpop.eup %1184 }
 0x1bb   : > { %v698_v30 = vpop.xlane.xlu0 %697  ;;  %v714_v31 = vsel %vm610_vm1, %v1185_v29, 0.0 }
 0x1bc   : > { %v702_v32 = vsub.f32 %v683_v13, %v698_v30  ;;  %715 = vadd.xlane.f32.xlu1 %v714_v31 }
 0x1be   : > { %v1187_v33 = vpop.eup %1186  ;;  %v709_v34 = vmul.f32 1.442695, %v702_v32 }
 0x1bf   : > { %v717_v35 = vsel %vm610_vm1, %v1187_v33, 0.0 }
 0x1c0   : > { %1188 = vpow2.f32 %v709_v34  ;;  %718 = vadd.xlane.f32.xlu2 %v717_v35 }
 0x1c6   : > { %v1189_v36 = vpop.eup %1188 }
 0x1c7   : > { %v720_v37 = vsel %vm610_vm1, %v1189_v36, 0.0 }
 0x1c8   : > { %721 = vadd.xlane.f32.xlu2 %v720_v37 }
 0x227   : > { %v713_v38 = vpop.xlane.xlu0 %712 }
 0x228   : > { %1190 = vrcp.f32 %v713_v38 }
 0x22e   : > { %v1191_v39 = vpop.eup %1190 }
 0x22f   : > { %v727_v40 = vmul.f32 %v1191_v39, %v1183_v23  ;;  %v716_v41 = vpop.xlane.xlu1 %715 }
 0x230   : > { %1192 = vrcp.f32 %v716_v41 }
 0x231   : > { %v731_v42 = vpack.c.bf16 %v727_v40, %v727_v40 }
 0x233   : > { %v719_v43 = vpop.xlane.xlu2 %718  ;;  %1106 = vmatmul.msk.bf16.vlgmr.msra.gmra.mxu0 %vm610_vm1, %v731_v42 }
 0x234   : > { %1194 = vrcp.f32 %v719_v43 }
 0x236   : > { %v1193_v44 = vpop.eup %1192 }
 0x237   : > { %v728_v45 = vmul.f32 %v1193_v44, %v1185_v29 }
 0x239   : > { %v732_v46 = vpack.c.bf16 %v728_v45, %v728_v45 }
 0x23a   : > { %v1195_v47 = vpop.eup %1194 }
 0x23b   : > { %v729_v48 = vmul.f32 %v1195_v47, %v1187_v33  ;;  %v722_v49 = vpop.xlane.xlu2 %721  ;;  %1107 = vmatmul.msk.bf16.vlgmr.msra.gmra.mxu1 %vm610_vm1, %v732_v46 }
 0x23c   : > { %1196 = vrcp.f32 %v722_v49 }
 0x23d   : > { %v733_v50 = vpack.c.bf16 %v729_v48, %v729_v48 }
 0x23f   : > { %1108 = vmatmul.msk.bf16.vlgmr.msra.gmra.mxu2 %vm610_vm1, %v733_v50 }
 0x242   : > { %v1197_v51 = vpop.eup %1196 }
 0x243   : > { %v730_v52 = vmul.f32 %v1197_v51, %v1189_v36 }
 0x245   : > { %v734_v53 = vpack.c.bf16 %v730_v52, %v730_v52 }
 0x247   : > { %1109 = vmatmul.msk.bf16.vlgmr.msra.gmra.mxu3 %vm610_vm1, %v734_v53 }
 0x2b0   : > { %v755_v62 = vpop.f32.mrf.mxu0 }
 0x2b1   : > { %v816_v63 = vpack.c.bf16 %v755_v62, %v755_v62 }
 0x2b3   : > { %1110 = vmatmul.msk.bf16.vlgmr.msrb.gmra.mxu0 %vm610_vm1, %v816_v63 }
 0x2b8   : > { %v757_v0 = vpop.f32.mrf.mxu0  ;;  %v774_v1 = vpop.f32.mrf.mxu1 }
 0x2b9   : > { %v817_v2 = vpack.c.bf16 %v774_v1, %v774_v1 }
 0x2bb   : > { %1111 = vmatmul.msk.bf16.vlgmr.msrb.gmra.mxu1 %vm610_vm1, %v817_v2 }
 0x2c0   : > { %v776_v3 = vpop.f32.mrf.mxu1 }
 0x2c2   : > { %v793_v4 = vpop.f32.mrf.mxu2 }
 0x2c3   : > { %v818_v5 = vpack.c.bf16 %v793_v4, %v793_v4 }
 0x2c5   : > { %1112 = vmatmul.msk.bf16.vlgmr.msrb.gmra.mxu2 %vm610_vm1, %v818_v5 }
 0x2ca   : > { %v795_v6 = vpop.f32.mrf.mxu2  ;;  %v812_v7 = vpop.f32.mrf.mxu3 }
 0x2cb   : > { %v819_v8 = vpack.c.bf16 %v812_v7, %v812_v7 }
 0x2cd   : > { %1113 = vmatmul.msk.bf16.vlgmr.msrb.gmra.mxu3 %vm610_vm1, %v819_v8 }
 0x2d2   : > { %v814_v9 = vpop.f32.mrf.mxu3 }
 0x330   : > { %v839_v10 = vpop.f32.mrf.mxu0 }
 0x331   : > { %v900_v16 = vsel %vm278_vm0, %v839_v10, 0.0 }
 0x338   : > { %v841_v11 = vpop.f32.mrf.mxu0  ;;  %v858_v12 = vpop.f32.mrf.mxu1 }
 0x339   : > { %v901_v15 = vsel %vm278_vm0, %v858_v12, 0.0 }
 0x33a   : > { %v902_v18 = vadd.f32 %v901_v15, %v900_v16 }
 0x340   : > { %v860_v13 = vpop.f32.mrf.mxu1 }
 0x348   : > { %v877_v14 = vpop.f32.mrf.mxu2 }
 0x349   : > { %v903_v17 = vsel %vm278_vm0, %v877_v14, 0.0 }
 0x34a   : > { %v904_v19 = vadd.f32 %v903_v17, %v902_v18 }
 0x350   : > { %v879_v20 = vpop.f32.mrf.mxu2  ;;  %v896_v21 = vpop.f32.mrf.mxu3 }
 0x351   : > { %v905_v23 = vsel %vm278_vm0, %v896_v21, 0.0 }
 0x352   : > { %v906_v24 = vadd.f32 %v905_v23, %v904_v19 }
 0x354   : > { %v911_v25 = vadd.f32 %v1181_v22, %v906_v24 }
 0x356   : > { %912 = vst.msk [vmem:[%s242_s25] sm:$0xff] %vm278_vm0, %v911_v25 }
 0x357   : > { %1225 = shalt.err (!%p1222_p3)
}
 0x358   : > { %1142 = dma.vmem_to_hbm [thread:$0]  (%p1335_p5), %s927_s18, 128, %s929_s19, %s914_s20   ;;  %v898_v26 = vpop.f32.mrf.mxu3 }
 0x359 PF: > { %p1148_p4 = scmp.ge.s32.totalorder %s1260_s24, 2  ;;  %s940_s10 = sand.u32 1, %s1248_s21  }
 0x35a   : > { %s941_s14 = scalar_lea.sflag [#allocation3], %s940_s10 }
 0x35b   : > { %p1145_p7 = pnand %p1148_p4, %p1339_p6 }
 0x35d   : > { %p1146_p8 = pneg %p1145_p7 }
 0x35f   : > { %1243 = dma.done.wait (%p1146_p8), %s941_s14, 128  }
 0x360   : > { %1245 = vsyncadd (%p1146_p8), %s941_s14, 4294967168  ;;  %p16_p9 = scmp.ge.s32.totalorder %s1322_s27, 4   ;;  %s1527_s21 = smov %s1252_s22 }
 0x361   : > { %s1528_s22 = smov %s1256_s23  ;;  %s1529_s23 = smov %s1333_s30 }
 0x362   : > { %s1530_s24 = smov %s1322_s27  ;;  %18 = sbr.rel (!%p16_p9) target bundleno = 3 (0x3), region = 79 }
 0x367   :  { %947 = vsyncpa [#allocation3], 1 }
 0x368   :  { %949 = vsyncpa [#allocation3 + $0x1], 1 }

</bundles_post_ra>
